<compile_context>
chip_gen: v7x
topology: tpu7x:2x2x1
jax: 0.10.0
libtpu: 0.0.40
codegen_flags: <defaults>
</compile_context>

<pallas_src>
import functools
import math

import jax
import jax.numpy as jnp
from jax.experimental import pallas as pl
from jax.experimental.pallas import tpu as pltpu

ALPHA = 0.5
GAMMA = 2.0


def _hybrid_loss_kernel(x_ref, t_ref, w_ref, out_ref, *, n_true, alpha, gamma, tn):
    pid = pl.program_id(0)

    @pl.when(pid == 0)
    def _init():
        out_ref[...] = jnp.zeros_like(out_ref)

    x = x_ref[...].astype(jnp.float32)        # (C, TN)  cast per-tile in-kernel
    t = t_ref[...]                            # (1, TN)  int32 targets
    w = w_ref[...]                            # (C, 1)   f32 class weights
    c = x.shape[0]

    # target "gather" via a single reused select mask (no materialized one-hot)
    mask = jax.lax.broadcasted_iota(jnp.int32, (c, tn), 0) == t          # (C, TN)

    # numerically stable log-softmax pieces on the shifted logits
    m = jnp.max(x, axis=0, keepdims=True)                                # (1, TN)
    d = x - m
    se = jnp.sum(jnp.exp(d), axis=0, keepdims=True)                      # (1, TN)
    d_t = jnp.sum(jnp.where(mask, d, 0.0), axis=0, keepdims=True)        # (1, TN)
    w_t = jnp.sum(jnp.where(mask, w, 0.0), axis=0, keepdims=True)        # (1, TN)

    ce = w_t * (jnp.log(se) - d_t)            # weighted CE, reduction='none'
    pt = jnp.exp(-ce)
    u = 1.0 - pt
    if gamma == 2.0:                          # static: square instead of float pow
        fmod = u * u
    elif gamma == 1.0:
        fmod = u
    else:
        fmod = jnp.power(jnp.maximum(u, 0.0), gamma)
    loss = ce * (alpha * fmod + (1.0 - alpha))                           # (1, TN)

    # mask padded tail rows (rows beyond the true N)
    col = jax.lax.broadcasted_iota(jnp.int32, (1, tn), 1) + pid * tn
    loss = jnp.where(col < n_true, loss, 0.0)

    out_ref[...] += jnp.sum(loss, axis=1, keepdims=True)                 # (1, 1)

    @pl.when(pid == pl.num_programs(0) - 1)
    def _finalize():
        out_ref[...] = out_ref[...] * jnp.float32(1.0 / n_true)


def hybrid_loss(logits, targets, class_weights, *, alpha=ALPHA, gamma=GAMMA,
                max_tile=8192):
    """logits: (..., C) float (any dtype), targets: (...) int, class_weights: (C,)."""
    c = logits.shape[-1]
    n = math.prod(logits.shape[:-1])
    if n == 0:
        # TODO(synk): the module's logging / empty-input / unsqueeze fallbacks
        # have no kernel equivalent; return the same 0.0 it would return.
        return jnp.float32(0.0)

    # Row-tile size: multiple of 128 lanes; keep the double-buffered logits
    # tile under ~8 MiB/buffer so it fits every generation's scoped VMEM.
    itemsize = jnp.dtype(logits.dtype).itemsize
    budget = 8 * 1024 * 1024
    tn_cap = max(128, (budget // (2 * c * itemsize)) // 128 * 128)
    if n <= min(max_tile, tn_cap):
        tn = n                                              # single tile, no pad
    else:
        tn = min(max_tile, tn_cap)
    n_pad = -(-n // tn) * tn

    # Small-C layout: rows on the lane axis, classes on sublanes.
    x = logits.reshape(n, c)                                # native dtype
    t = targets.reshape(1, n).astype(jnp.int32)             # (1, N)
    if n_pad != n:
        x = jnp.pad(x, ((0, n_pad - n), (0, 0)))
        t = jnp.pad(t, ((0, 0), (0, n_pad - n)))
    x = jnp.transpose(x)                                    # (C, N_pad)
    w = class_weights.reshape(c, 1).astype(jnp.float32)     # (C, 1)
    grid = (n_pad // tn,)

    kernel = functools.partial(
        _hybrid_loss_kernel, n_true=n, alpha=float(alpha), gamma=float(gamma), tn=tn
    )
    out = pl.pallas_call(
        kernel,
        out_shape=jax.ShapeDtypeStruct((1, 1), jnp.float32),
        grid=grid,
        in_specs=[
            pl.BlockSpec((c, tn), lambda i: (0, i)),        # logits tile (streamed)
            pl.BlockSpec((1, tn), lambda i: (0, i)),        # targets tile
            pl.BlockSpec((c, 1), lambda i: (0, 0)),         # weights: VMEM-resident
        ],
        out_specs=pl.BlockSpec((1, 1), lambda i: (0, 0)),   # resident accumulator
        compiler_params=pltpu.CompilerParams(
            dimension_semantics=("arbitrary",),             # output revisited
            vmem_limit_bytes=32 * 1024 * 1024,
        ),
    )(x, t, w)
    return out[0, 0]


def hybrid_loss_ref(logits, targets, class_weights, *, alpha=ALPHA, gamma=GAMMA):
    """Pure-JAX reference for validation."""
    c = logits.shape[-1]
    x = logits.reshape(-1, c).astype(jnp.float32)
    t = targets.reshape(-1).astype(jnp.int32)
    w = class_weights.astype(jnp.float32)
    logp = jax.nn.log_softmax(x, axis=-1)
    logp_t = jnp.take_along_axis(logp, t[:, None], axis=-1)[:, 0]
    ce = -w[t] * logp_t
    pt = jnp.exp(-ce)
    focal = (1.0 - pt) ** gamma * ce
    return (alpha * focal + (1.0 - alpha) * ce).mean()


if __name__ == "__main__":
    key = jax.random.PRNGKey(0)
    batch, seq, num_classes = 2, 8, 4
    k1, k2 = jax.random.split(key)

    logits = jax.random.normal(k1, (batch, seq, num_classes), dtype=jnp.float32)
    targets = jax.random.randint(k2, (batch, seq), 0, num_classes, dtype=jnp.int32)
    class_weights = jnp.array([1.0, 2.0, 0.5, 1.5], dtype=jnp.float32)

    # f32 single-tile path
    out = hybrid_loss(logits, targets, class_weights)
    jax.block_until_ready(out)
    ref = hybrid_loss_ref(logits, targets, class_weights)
    assert jnp.allclose(out, ref, rtol=1e-5, atol=1e-5), (out, ref)

    # native bf16 HBM stream (kernel casts per-tile; no wrapper upcast)
    logits_bf16 = logits.astype(jnp.bfloat16)
    out_b = hybrid_loss(logits_bf16, targets, class_weights)
    jax.block_until_ready(out_b)
    ref_b = hybrid_loss_ref(logits_bf16, targets, class_weights)
    assert jnp.allclose(out_b, ref_b, rtol=1e-4, atol=1e-4), (out_b, ref_b)

    # multi-tile grid with padded tail (N = 2000 -> 4 tiles of 512, 48 masked rows)
    k3, k4 = jax.random.split(k1)
    big_logits = jax.random.normal(k3, (4, 500, num_classes), dtype=jnp.float32)
    big_targets = jax.random.randint(k4, (4, 500), 0, num_classes, dtype=jnp.int32)
    out_big = hybrid_loss(big_logits, big_targets, class_weights, max_tile=512)
    jax.block_until_ready(out_big)
    ref_big = hybrid_loss_ref(big_logits, big_targets, class_weights)
    assert jnp.allclose(out_big, ref_big, rtol=1e-4, atol=1e-5), (out_big, ref_big)

    print("KERNEL_OK")
</pallas_src>

<mosaic_0001>
module attributes {stable_mosaic.version = 11 : i64} {
  func.func @_hybrid_loss_kernel(%arg0: i32, %arg1: memref<4x16xf32, #tpu.memory_space<vmem>>, %arg2: memref<1x16xi32, #tpu.memory_space<vmem>>, %arg3: memref<4x1xf32, #tpu.memory_space<vmem>>, %arg4: memref<1x1xf32, #tpu.memory_space<vmem>>) attributes {dimension_semantics = [#tpu.dimension_semantics<arbitrary>], iteration_bounds = array<i64: 1>, scalar_prefetch = 0 : i64, scratch_operands = 0 : i64, tpu.core_type = #tpu.core_type<tc>, window_params = [{transform_indices = @transform_0, window_bounds = array<i64: 4, 16>}, {transform_indices = @transform_1, window_bounds = array<i64: 1, 16>}, {pipeline_mode = #tpu.pipeline_mode<synchronous>, transform_indices = @transform_2, window_bounds = array<i64: 4, 1>}, {pipeline_mode = #tpu.pipeline_mode<synchronous>, transform_indices = @transform_3, window_bounds = array<i64: 1, 1>}]} {
    %c0_i32 = arith.constant 0 : i32
    %0 = arith.cmpi eq, %arg0, %c0_i32 : i32
    %1 = arith.extui %0 : i1 to i32
    %c0_i32_0 = arith.constant 0 : i32
    %2 = arith.cmpi ne, %1, %c0_i32_0 : i32
    scf.if %2 {
      %cst_24 = arith.constant 0.000000e+00 : f32
      %56 = vector.broadcast %cst_24 : f32 to vector<1x1xf32>
      %c0_25 = arith.constant 0 : index
      %c0_26 = arith.constant 0 : index
      %57 = vector.load %arg4[%c0_25, %c0_26] : memref<1x1xf32, #tpu.memory_space<vmem>>, vector<1x1xf32>
      tpu.vector_store %arg4[%c0_25, %c0_26], %56 {strides = array<i32>} : memref<1x1xf32, #tpu.memory_space<vmem>>, vector<1x1xf32>,
    } else {
    }
    %c0 = arith.constant 0 : index
    %c0_1 = arith.constant 0 : index
    %3 = vector.load %arg1[%c0, %c0_1] : memref<4x16xf32, #tpu.memory_space<vmem>>, vector<4x16xf32>
    %c0_2 = arith.constant 0 : index
    %c0_3 = arith.constant 0 : index
    %4 = vector.load %arg2[%c0_2, %c0_3] : memref<1x16xi32, #tpu.memory_space<vmem>>, vector<1x16xi32>
    %c0_4 = arith.constant 0 : index
    %c0_5 = arith.constant 0 : index
    %5 = vector.load %arg3[%c0_4, %c0_5] : memref<4x1xf32, #tpu.memory_space<vmem>>, vector<4x1xf32>
    %6 = tpu.iota {dimensions = array<i32: 0>} : vector<4x16xi32>
    %7 = vector.broadcast %4 : vector<1x16xi32> to vector<4x16xi32>
    %8 = arith.cmpi eq, %6, %7 : vector<4x16xi32>
    %cst = arith.constant dense<0xFF800000> : vector<16xf32>
    %9 = vector.multi_reduction <maximumf>, %3, %cst [0] : vector<4x16xf32> to vector<16xf32>
    %10 = vector.shape_cast %9 : vector<16xf32> to vector<1x16xf32>
    %11 = vector.broadcast %10 : vector<1x16xf32> to vector<4x16xf32>
    %12 = arith.subf %3, %11 : vector<4x16xf32>
    %13 = math.exp %12 : vector<4x16xf32>
    %cst_6 = arith.constant dense<0.000000e+00> : vector<16xf32>
    %14 = vector.multi_reduction <add>, %13, %cst_6 [0] : vector<4x16xf32> to vector<16xf32>
    %15 = vector.shape_cast %14 : vector<16xf32> to vector<1x16xf32>
    %cst_7 = arith.constant 0.000000e+00 : f32
    %16 = vector.broadcast %cst_7 : f32 to vector<4x16xf32>
    %17 = arith.select %8, %12, %16 : vector<4x16xi1>, vector<4x16xf32>
    %cst_8 = arith.constant dense<0.000000e+00> : vector<16xf32>
    %18 = vector.multi_reduction <add>, %17, %cst_8 [0] : vector<4x16xf32> to vector<16xf32>
    %19 = vector.shape_cast %18 : vector<16xf32> to vector<1x16xf32>
    %cst_9 = arith.constant 0.000000e+00 : f32
    %20 = vector.shape_cast %5 : vector<4x1xf32> to vector<4x1xf32>
    %21 = vector.broadcast %20 : vector<4x1xf32> to vector<4x16xf32>
    %22 = vector.broadcast %cst_9 : f32 to vector<4x16xf32>
    %23 = arith.select %8, %21, %22 : vector<4x16xi1>, vector<4x16xf32>
    %cst_10 = arith.constant dense<0.000000e+00> : vector<16xf32>
    %24 = vector.multi_reduction <add>, %23, %cst_10 [0] : vector<4x16xf32> to vector<16xf32>
    %25 = vector.shape_cast %24 : vector<16xf32> to vector<1x16xf32>
    %26 = math.log %15 : vector<1x16xf32>
    %27 = arith.subf %26, %19 : vector<1x16xf32>
    %28 = arith.mulf %25, %27 : vector<1x16xf32>
    %cst_11 = arith.constant 0.000000e+00 : f32
    %29 = vector.broadcast %cst_11 : f32 to vector<1x16xf32>
    %30 = arith.subf %29, %28 : vector<1x16xf32>
    %31 = math.exp %30 : vector<1x16xf32>
    %cst_12 = arith.constant 1.000000e+00 : f32
    %32 = vector.broadcast %cst_12 : f32 to vector<1x16xf32>
    %33 = arith.subf %32, %31 : vector<1x16xf32>
    %34 = arith.mulf %33, %33 : vector<1x16xf32>
    %cst_13 = arith.constant 5.000000e-01 : f32
    %35 = vector.broadcast %cst_13 : f32 to vector<1x16xf32>
    %36 = arith.mulf %35, %34 : vector<1x16xf32>
    %cst_14 = arith.constant 5.000000e-01 : f32
    %37 = vector.broadcast %cst_14 : f32 to vector<1x16xf32>
    %38 = arith.addf %36, %37 : vector<1x16xf32>
    %39 = arith.mulf %28, %38 : vector<1x16xf32>
    %40 = tpu.iota {dimensions = array<i32: 1>} : vector<1x16xi32>
    %c16_i32 = arith.constant 16 : i32
    %41 = arith.muli %arg0, %c16_i32 : i32
    %42 = vector.broadcast %41 : i32 to vector<1x16xi32>
    %43 = arith.addi %40, %42 : vector<1x16xi32>
    %c16_i32_15 = arith.constant 16 : i32
    %44 = vector.broadcast %c16_i32_15 : i32 to vector<1x16xi32>
    %45 = arith.cmpi slt, %43, %44 : vector<1x16xi32>
    %cst_16 = arith.constant 0.000000e+00 : f32
    %46 = vector.broadcast %cst_16 : f32 to vector<1x16xf32>
    %47 = arith.select %45, %39, %46 : vector<1x16xi1>, vector<1x16xf32>
    %c0_17 = arith.constant 0 : index
    %c0_18 = arith.constant 0 : index
    %48 = vector.load %arg4[%c0_17, %c0_18] : memref<1x1xf32, #tpu.memory_space<vmem>>, vector<1x1xf32>
    %cst_19 = arith.constant dense<0.000000e+00> : vector<1xf32>
    %49 = vector.multi_reduction <add>, %47, %cst_19 [1] : vector<1x16xf32> to vector<1xf32>
    %50 = vector.shape_cast %49 : vector<1xf32> to vector<1x1xf32>
    %51 = arith.addf %48, %50 : vector<1x1xf32>
    %c0_20 = arith.constant 0 : index
    %c0_21 = arith.constant 0 : index
    %52 = vector.load %arg4[%c0_20, %c0_21] : memref<1x1xf32, #tpu.memory_space<vmem>>, vector<1x1xf32>
    tpu.vector_store %arg4[%c0_20, %c0_21], %51 {strides = array<i32>} : memref<1x1xf32, #tpu.memory_space<vmem>>, vector<1x1xf32>,
    %c0_i32_22 = arith.constant 0 : i32
    %53 = arith.cmpi eq, %arg0, %c0_i32_22 : i32
    %54 = arith.extui %53 : i1 to i32
    %c0_i32_23 = arith.constant 0 : i32
    %55 = arith.cmpi ne, %54, %c0_i32_23 : i32
    scf.if %55 {
      %c0_24 = arith.constant 0 : index
      %c0_25 = arith.constant 0 : index
      %56 = vector.load %arg4[%c0_24, %c0_25] : memref<1x1xf32, #tpu.memory_space<vmem>>, vector<1x1xf32>
      %cst_26 = arith.constant 6.250000e-02 : f32
      %57 = vector.broadcast %cst_26 : f32 to vector<1x1xf32>
      %58 = arith.mulf %56, %57 : vector<1x1xf32>
      %c0_27 = arith.constant 0 : index
      %c0_28 = arith.constant 0 : index
      %59 = vector.load %arg4[%c0_27, %c0_28] : memref<1x1xf32, #tpu.memory_space<vmem>>, vector<1x1xf32>
      tpu.vector_store %arg4[%c0_27, %c0_28], %58 {strides = array<i32>} : memref<1x1xf32, #tpu.memory_space<vmem>>, vector<1x1xf32>,
    } else {
    }
    return
  }
  func.func @transform_0(%arg0: i32) -> (i32, i32) {
    %c0_i32 = arith.constant 0 : i32
    %c0_i32_0 = arith.constant 0 : i32
    return %c0_i32, %arg0 : i32, i32
  }
  func.func @transform_1(%arg0: i32) -> (i32, i32) {
    %c0_i32 = arith.constant 0 : i32
    %c0_i32_0 = arith.constant 0 : i32
    return %c0_i32, %arg0 : i32, i32
  }
  func.func @transform_2(%arg0: i32) -> (i32, i32) {
    %c0_i32 = arith.constant 0 : i32
    %c0_i32_0 = arith.constant 0 : i32
    %c0_i32_1 = arith.constant 0 : i32
    return %c0_i32, %c0_i32_0 : i32, i32
  }
  func.func @transform_3(%arg0: i32) -> (i32, i32) {
    %c0_i32 = arith.constant 0 : i32
    %c0_i32_0 = arith.constant 0 : i32
    %c0_i32_1 = arith.constant 0 : i32
    return %c0_i32, %c0_i32_0 : i32, i32
  }
}

</mosaic_0001>

<bundles_post_ra>
// kernel: tpu_custom_call.1
= control target key start
LH: loop header
LB: loop body
LE: loop exit
PB: predicated region body
PF: predicated region fallthrough
CT: control target
= control target key end

     0   :  { %v152_v1 = vmov 0   ;;  %s200_s0 = inlined_call_operand.vmem [shape: f32[4,16], index: 0, kind: input, shape index: {}]   ;;  %s201_s1 = inlined_call_operand.vmem [shape: s32[1,16], index: 1, kind: input, shape index: {}]   ;;  %s202_s2 = inlined_call_operand.vmem [shape: f32[4,1], index: 2, kind: input, shape index: {}]   ;;  %s203_s3 = inlined_call_operand.hbm [shape: f32[1,1], index: 3, kind: output, shape index: {}]  }
   0x1   :  { %v23_v0 = vld [vmem:[%s202_s2] sm:$0xf]  ;;  %121 = vset.pattern.permute.xlu0 %v152_v1 }
   0x2   :  { %8 = vsyncpa [#allocation3], 0  ;;  %59 = vperm.xlu0 %121, %v23_v0   ;;  %vm31_vm0 = vcmask 125952   ;;  %v21_v2 = vld [vmem:[%s200_s0] sm:$0xf]  ;;  %v24_v14 = vlaneseq  ;;  %vm90_vm3 = vcmask 130048  }
   0x3   :  { %v32_v3 = vsel %vm31_vm0, %v21_v2, -inf  ;;  %v117_v18 = vld [vmem:[%s201_s1] ss:$0 sm:$0xff]  ;;  %vm19_vm4 = vcmask 0   ;;  %v153_v55 = vmov 0.0   ;;  %s154_s1 = smov [#allocation2]  }
   0x4   :  { %v33_v4 = vrot.slane %v32_v3, 4  ;;  %v25_v16 = vshrl.u32 %v24_v14, 7  ;;  %v83_v49 = vand.u32 127, %v24_v14  ;;  %20 = vst.msk [vmem:[#allocation2] sm:$0x1] %vm19_vm4, %v153_v55  ;;  %s109_s16 = sshll.u32 %s154_s1, 4  ;;  %s110_s16 = int_to_ptr.vmem [resolvable:$true] %s109_s16 }
   0x5   :  { %s128_s17 = scalar_lea.vmem %s110_s16, 16  ;;  %s132_s18 = scalar_lea.vmem %s110_s16, 32 }
   0x6   :  { %v34_v5 = vmax.f32 %v32_v3, %v33_v4  ;;  %vm30_vm1 = vcmp.eq.s32.totalorder %v25_v16, %v117_v18  ;;  %vm87_vm2 = vcmp.lt.s32.totalorder %v83_v49, 16  ;;  %p129_p0 = scmp.ne.s32.totalorder %s110_s16, %s128_s17  ;;  %p133_p1 = scmp.lt.s32.totalorder %s110_s16, %s110_s16 }
   0x7   :  { %p134_p2 = scmp.lt.s32.totalorder %s132_s18, %s128_s17 }
   0x8   :  { %v35_v6 = vrot.slane %v34_v5, 2 }
   0x9   :  { %p135_p3 = por %p134_p2, %p133_p1 }
   0xa   :  { %v36_v7 = vmax.f32 %v34_v5, %v35_v6 }
   0xb   :  { %v89_v56 = vld [vmem:[#allocation2] sm:$0x1]  ;;  %p136_p4 = pnand %p135_p3, %p129_p0 }
   0xc   :  { %v37_v8 = vrot.slane %v36_v7, 1 }
   0xe   :  { %v38_v9 = vmax.f32 %v36_v7, %v37_v8 }
  0x10   :  { %v39_v10 = vsub.f32 %v21_v2, %v38_v9 }
  0x12   :  { %v40_v11 = vmul.f32 1.442695, %v39_v10  ;;  %v49_v20 = vsel %vm30_vm1, %v39_v10, 0.0 }
  0x13   :  { %v50_v22 = vsel %vm31_vm0, %v49_v20, 0.0 }
  0x14   :  { %122 = vpow2.f32 %v40_v11  ;;  %v51_v24 = vrot.slane %v50_v22, 4 }
  0x16   :  { %v52_v26 = vadd.f32 %v51_v24, %v50_v22 }
  0x18   :  { %v53_v27 = vrot.slane %v52_v26, 2 }
  0x1a   :  { %v54_v28 = vadd.f32 %v53_v27, %v52_v26 }
  0x1c   :  { %v55_v32 = vrot.slane %v54_v28, 1 }
  0x1e   :  { %v123_v12 = vpop.eup %122  ;;  %v56_v36 = vadd.f32 %v55_v32, %v54_v28 }
  0x1f   :  { %v42_v13 = vsel %vm31_vm0, %v123_v12, 0.0 }
  0x20   :  { %v43_v15 = vrot.slane %v42_v13, 4 }
  0x22   :  { %v44_v17 = vadd.f32 %v43_v15, %v42_v13 }
  0x24   :  { %v45_v19 = vrot.slane %v44_v17, 2 }
  0x26   :  { %v46_v21 = vadd.f32 %v45_v19, %v44_v17 }
  0x28   :  { %v47_v23 = vrot.slane %v46_v21, 1 }
  0x2a   :  { %v48_v25 = vadd.f32 %v47_v23, %v46_v21 }
  0x2c   :  { %124 = vlog2.f32 %v48_v25 }
  0x36   :  { %v125_v34 = vpop.eup %124 }
  0x37   :  { %v71_v38 = vmul.f32 0.6931472, %v125_v34 }
  0x39   :  { %v72_v41 = vsub.f32 %v71_v38, %v56_v36 }
  0x81   :  { %v60_v29 = vpop.permute.xlu0 %59 }
  0x82   :  { %v62_v30 = vsel %vm30_vm1, %v60_v29, 0.0 }
  0x83   :  { %v63_v31 = vsel %vm31_vm0, %v62_v30, 0.0 }
  0x84   :  { %v64_v33 = vrot.slane %v63_v31, 4 }
  0x86   :  { %v65_v35 = vadd.f32 %v64_v33, %v63_v31 }
  0x88   :  { %v66_v37 = vrot.slane %v65_v35, 2 }
  0x8a   :  { %v67_v39 = vadd.f32 %v66_v37, %v65_v35 }
  0x8c   :  { %v68_v40 = vrot.slane %v67_v39, 1 }
  0x8e   :  { %v69_v42 = vadd.f32 %v68_v40, %v67_v39 }
  0x90   :  { %v73_v43 = vmul.f32 %v72_v41, %v69_v42 }
  0x92   :  { %v74_v44 = vsub.f32 0.0, %v73_v43 }
  0x94   :  { %v75_v45 = vmul.f32 1.442695, %v74_v44 }
  0x96   :  { %126 = vpow2.f32 %v75_v45 }
  0xa0   :  { %v127_v46 = vpop.eup %126 }
  0xa1   :  { %v77_v47 = vsub.f32 1.0, %v127_v46 }
  0xa3   :  { %v78_v48 = vmul.f32 %v77_v47, %v77_v47 }
  0xa5   :  { %v79_v50 = vmul.f32 0.5, %v78_v48 }
  0xa7   :  { %v80_v51 = vadd.f32 0.5, %v79_v50 }
  0xa9   :  { %v81_v52 = vmul.f32 %v80_v51, %v73_v43 }
  0xab   :  { %v88_v53 = vsel %vm87_vm2, %v81_v52, 0.0 }
  0xac   :  { %v91_v54 = vsel %vm90_vm3, %v88_v53, 0.0 }
  0xad   :  { %92 = vadd.xlane.f32.xlu0 %v91_v54 }
 0x13a   :  { %v93_v57 = vpop.xlane.xlu0 %92 }
 0x13b   :  { %v94_v58 = vadd.f32 %v93_v57, %v89_v56 }
 0x13d   :  { %96 = vst.msk [vmem:[#allocation2] sm:$0x1] %vm19_vm4, %v94_v58 }
 0x144   :  { %v100_v59 = vld [vmem:[#allocation2] sm:$0x1] }
 0x145   :  { %v101_v60 = vmul.f32 0.0625, %v100_v59 }
 0x147   :  { %102 = vst.msk [vmem:[#allocation2] sm:$0x1] %vm19_vm4, %v101_v60 }
 0x148   :  { %139 = shalt.err (!%p136_p4)
}
 0x149   :  { %s140_s21 = scalar_lea.hbm %s203_s3, 16 }
 0x14a   :  { %p141_p5 = scmp.ne.s32.totalorder %s203_s3, %s140_s21  ;;  %p144_p6 = scmp.lt.u32.totalorder %s140_s21, %s203_s3 }
 0x14c   :  { %p146_p7 = pnand %p144_p6, %p141_p5 }
 0x14e   :  { %149 = shalt.err (!%p146_p7)
}
 0x14f   :  { %112 = dma.vmem_to_hbm [thread:$0]  %s110_s16, 16, %s203_s3, [#allocation3]  }
 0x150   :  { %150 = dma.done.wait [#allocation3], 16  }
 0x151   :  { %151 = vsyncadd [#allocation3], 4294967280 }
 0x152   :  { %116 = vsyncpa [#allocation3], 1 }

</bundles_post_ra>
